<compile_context>
chip_gen: v7x
topology: tpu7x:2x2x1
jax: 0.10.0
libtpu: 0.0.40
codegen_flags: <defaults>
</compile_context>

<pallas_src>
import jax
import jax.numpy as jnp
from jax.experimental import pallas as pl
from jax.experimental.pallas import tpu as pltpu


def _copy_kernel(x_ref, o_ref):
    # Pure data movement: load the (tile_rows, H) block and store it back.
    o_ref[...] = x_ref[...]


def _pick_tile_rows(rows, hidden, dtype):
    """Largest dtype-aligned row tile that fits a conservative VMEM budget."""
    itemsize = jnp.dtype(dtype).itemsize
    sublane = max(1, 32 // itemsize)          # 8 f32, 16 bf16, 32 int8/fp8
    # in + out, each double-buffered => 4 live buffers.  ~6 MiB per buffer
    # (~24 MiB total) stays inside v7x's 32 MiB scoped-VMEM default while
    # still being huge relative to the per-step overhead.
    per_buffer_budget = 6 * 1024 * 1024
    max_rows = (per_buffer_budget // (hidden * itemsize)) // sublane * sublane
    max_rows = max(sublane, max_rows)
    # Round the total row count up to the sublane packing so a single block
    # covers small inputs entirely (grid of 1, unmasked).
    rows_padded = pl.cdiv(rows, sublane) * sublane
    return min(max_rows, rows_padded)


def view_as_heads(x39, x31, *, materialize=True):
    """Replicates M.forward: x31.view(x39 + (12, 64))."""
    # --- glue: operator.add on shape tuples ---
    x40 = tuple(x39) + (12, 64)

    *lead, H = x31.shape
    assert H == 12 * 64, "module semantics require hidden = 12*64 = 768"

    if not materialize:
        # Recommended fast path: a contiguous view is metadata-only in XLA.
        return x31.reshape(x40)

    rows = 1
    for d in lead:
        rows *= d
    flat = x31.reshape(rows, H)               # contiguous, no data movement

    tile_rows = _pick_tile_rows(rows, H, x31.dtype)
    grid = (pl.cdiv(rows, tile_rows),)

    copied = pl.pallas_call(
        _copy_kernel,
        out_shape=jax.ShapeDtypeStruct((rows, H), x31.dtype),
        grid_spec=pltpu.PrefetchScalarGridSpec(
            num_scalar_prefetch=0,
            grid=grid,
            in_specs=[pl.BlockSpec((tile_rows, H), lambda i: (i, 0))],
            out_specs=pl.BlockSpec((tile_rows, H), lambda i: (i, 0)),
        ),
        compiler_params=pltpu.CompilerParams(
            dimension_semantics=("parallel",),
        ),
    )(flat)

    # --- glue: the actual .view() -> (1, S, 12, 64) ---
    return copied.reshape(x40)


if __name__ == "__main__":
    key = jax.random.PRNGKey(0)
    # Small shapes consistent with the module: batch=1, hidden=12*64=768.
    S = 16
    x31 = jax.random.normal(key, (1, S, 768), dtype=jnp.float32)
    x39 = (1, S)

    out = view_as_heads(x39, x31, materialize=True)   # exercises the kernel
    out = jax.block_until_ready(out)

    # Correctness check against the pure-JAX reference (view semantics).
    ref = x31.reshape((1, S, 12, 64))
    assert out.shape == (1, S, 12, 64)
    assert out.dtype == x31.dtype
    assert bool(jnp.array_equal(out, ref))

    # Fast (metadata-only) path must also match.
    out_view = view_as_heads(x39, x31, materialize=False)
    assert bool(jnp.array_equal(out_view, ref))

    print("KERNEL_OK")
</pallas_src>

<mosaic_0001>
module attributes {stable_mosaic.version = 11 : i64} {
  func.func @_copy_kernel(%arg0: i32, %arg1: memref<16x768xf32, #tpu.memory_space<vmem>>, %arg2: memref<16x768xf32, #tpu.memory_space<vmem>>) attributes {dimension_semantics = [#tpu.dimension_semantics<parallel>], iteration_bounds = array<i64: 1>, scalar_prefetch = 0 : i64, scratch_operands = 0 : i64, tpu.core_type = #tpu.core_type<tc>, window_params = [{transform_indices = @transform_0, window_bounds = array<i64: 16, 768>}, {transform_indices = @transform_1, window_bounds = array<i64: 16, 768>}]} {
    %c0 = arith.constant 0 : index
    %c0_0 = arith.constant 0 : index
    %0 = vector.load %arg1[%c0, %c0_0] : memref<16x768xf32, #tpu.memory_space<vmem>>, vector<16x768xf32>
    %c0_1 = arith.constant 0 : index
    %c0_2 = arith.constant 0 : index
    %1 = vector.load %arg2[%c0_1, %c0_2] : memref<16x768xf32, #tpu.memory_space<vmem>>, vector<16x768xf32>
    tpu.vector_store %arg2[%c0_1, %c0_2], %0 {strides = array<i32>} : memref<16x768xf32, #tpu.memory_space<vmem>>, vector<16x768xf32>,
    return
  }
  func.func @transform_0(%arg0: i32) -> (i32, i32) {
    %c0_i32 = arith.constant 0 : i32
    %c0_i32_0 = arith.constant 0 : i32
    return %arg0, %c0_i32 : i32, i32
  }
  func.func @transform_1(%arg0: i32) -> (i32, i32) {
    %c0_i32 = arith.constant 0 : i32
    %c0_i32_0 = arith.constant 0 : i32
    return %arg0, %c0_i32 : i32, i32
  }
}

</mosaic_0001>

<bundles_post_ra>
// kernel: tpu_custom_call.1
= control target key start
LH: loop header
LB: loop body
LE: loop exit
PB: predicated region body
PF: predicated region fallthrough
CT: control target
= control target key end

     0   :  { %6 = vsyncpa [#allocation3], 0  ;;  %s160_s0 = inlined_call_operand.hbm [shape: f32[16,768], index: 0, kind: input, shape index: {}]   ;;  %s161_s1 = inlined_call_operand.hbm [shape: f32[16,768], index: 1, kind: output, shape index: {}]  }
   0x1   :  { %7 = vsyncpa [#allocation4], 0  ;;  %s116_s6 = smov [#allocation2]   ;;  %s68_s10 = scalar_lea.hbm %s160_s0, 1536 }
   0x2   :  { %s13_s7 = sshll.u32 %s116_s6, 4  ;;  %p69_p0 = scmp.ne.s32.totalorder %s160_s0, %s68_s10  ;;  %s14_s7 = int_to_ptr.vmem [resolvable:$true] %s13_s7 }
   0x3   :  { %p72_p1 = scmp.lt.u32.totalorder %s68_s10, %s160_s0 }
   0x5   :  { %p74_p2 = pnand %p72_p1, %p69_p0 }
   0x7   :  { %77 = shalt.err (!%p74_p2)
}
   0x8   :  { %s78_s15 = scalar_lea.vmem %s14_s7, 1536  ;;  %p83_p4 = scmp.lt.s32.totalorder %s14_s7, %s14_s7 }
   0x9   :  { %p79_p3 = scmp.ne.s32.totalorder %s14_s7, %s78_s15  ;;  %p84_p5 = scmp.lt.s32.totalorder %s78_s15, %s78_s15 }
   0xb   :  { %p85_p6 = por %p84_p5, %p83_p4 }
   0xd   :  { %p86_p7 = pnand %p85_p6, %p79_p3 }
   0xf   :  { %89 = shalt.err (!%p86_p7)
}
  0x10   :  { %s117_s16 = smov 768   ;;  %s118_s17 = smov 48  }
  0x11   :  { %19 = dma.hbm_to_vmem [thread:$0]  %s160_s0, 1536, %s14_s7, [#allocation3], %s117_s16, %s117_s16, %s118_s17  }
  0x12   :  { %112 = dma.done.wait [#allocation3], 1536  }
  0x13   :  { %113 = vsyncadd [#allocation3], 4294965760  ;;  %s119_s20 = smov [#allocation5]   ;;  %v23_v0 = vld [vmem:[#allocation2] sm:$0xff]  ;;  %v24_v1 = vld [vmem:[#allocation2 + $0x8] sm:$0xff] }
  0x14   :  { %s52_s21 = sshll.u32 %s119_s20, 4  ;;  %v25_v2 = vld [vmem:[#allocation2 + $0x10] sm:$0xff]  ;;  %35 = vst [vmem:[#allocation5] sm:$0xff] %v23_v0  ;;  %36 = vst [vmem:[#allocation5 + $0x8] sm:$0xff] %v24_v1  ;;  %v26_v3 = vld [vmem:[#allocation2 + $0x18] sm:$0xff]  ;;  %s53_s21 = int_to_ptr.vmem [resolvable:$true] %s52_s21 }
  0x15   :  { %37 = vst [vmem:[#allocation5 + $0x10] sm:$0xff] %v25_v2  ;;  %v27_v4 = vld [vmem:[#allocation2 + $0x20] sm:$0xff]  ;;  %v28_v5 = vld [vmem:[#allocation2 + $0x28] sm:$0xff]  ;;  %38 = vst [vmem:[#allocation5 + $0x18] sm:$0xff] %v26_v3  ;;  %s90_s0 = scalar_lea.vmem %s53_s21, 1536  ;;  %p95_p9 = scmp.lt.s32.totalorder %s53_s21, %s53_s21 }
  0x16   :  { %39 = vst [vmem:[#allocation5 + $0x20] sm:$0xff] %v27_v4  ;;  %40 = vst [vmem:[#allocation5 + $0x28] sm:$0xff] %v28_v5  ;;  %v29_v6 = vld [vmem:[#allocation2 + $0x30] sm:$0xff]  ;;  %v30_v7 = vld [vmem:[#allocation2 + $0x38] sm:$0xff]  ;;  %p91_p8 = scmp.ne.s32.totalorder %s53_s21, %s90_s0  ;;  %p96_p10 = scmp.lt.s32.totalorder %s90_s0, %s90_s0 }
  0x17   :  { %v31_v8 = vld [vmem:[#allocation2 + $0x40] sm:$0xff]  ;;  %41 = vst [vmem:[#allocation5 + $0x30] sm:$0xff] %v29_v6  ;;  %42 = vst [vmem:[#allocation5 + $0x38] sm:$0xff] %v30_v7  ;;  %v32_v9 = vld [vmem:[#allocation2 + $0x48] sm:$0xff] }
  0x18   :  { %43 = vst [vmem:[#allocation5 + $0x40] sm:$0xff] %v31_v8  ;;  %v33_v10 = vld [vmem:[#allocation2 + $0x50] sm:$0xff]  ;;  %v34_v11 = vld [vmem:[#allocation2 + $0x58] sm:$0xff]  ;;  %44 = vst [vmem:[#allocation5 + $0x48] sm:$0xff] %v32_v9  ;;  %p97_p11 = por %p96_p10, %p95_p9 }
  0x19   :  { %45 = vst [vmem:[#allocation5 + $0x50] sm:$0xff] %v33_v10  ;;  %46 = vst [vmem:[#allocation5 + $0x58] sm:$0xff] %v34_v11 }
  0x1a   :  { %p98_p12 = pnand %p97_p11, %p91_p8 }
  0x1c   :  { %101 = shalt.err (!%p98_p12)
}
  0x1d   :  { %s102_s24 = scalar_lea.hbm %s161_s1, 1536 }
  0x1e   :  { %p103_p13 = scmp.ne.s32.totalorder %s161_s1, %s102_s24  ;;  %p106_p0 = scmp.lt.u32.totalorder %s102_s24, %s161_s1 }
  0x20   :  { %p108_p1 = pnand %p106_p0, %p103_p13 }
  0x22   :  { %111 = shalt.err (!%p108_p1)
}
  0x23   :  { %58 = dma.vmem_to_hbm [thread:$0]  %s53_s21, 1536, %s161_s1, [#allocation4], %s117_s16, %s117_s16, %s118_s17  }
  0x24   :  { %114 = dma.done.wait [#allocation4], 1536  }
  0x25   :  { %115 = vsyncadd [#allocation4], 4294965760 }
  0x26   :  { %62 = vsyncpa [#allocation3], 1 }
  0x27   :  { %63 = vsyncpa [#allocation4], 1 }

</bundles_post_ra>
